<compile_context>
chip_gen: v7x
topology: tpu7x:2x2x1
jax: 0.10.0
libtpu: 0.0.40
codegen_flags: <defaults>
</compile_context>

<pallas_src>
import functools

import jax
import jax.numpy as jnp
from jax.experimental import pallas as pl
from jax.experimental.pallas import tpu as pltpu

LANE = 128
SUBLANE = 8


def _round_up(x, m):
    return ((x + m - 1) // m) * m


def _pad2d(a, rows, cols):
    r, c = a.shape
    if (r, c) == (rows, cols):
        return a
    return jnp.zeros((rows, cols), a.dtype).at[:r, :c].set(a)


def dqn_kernel(x_ref,
               w1_ref, b1_ref,
               w2_ref, b2_ref,
               w3_ref, b3_ref,
               w4_ref, b4_ref,
               out_ref):
    # Matmuls accumulate in f32 on the MXU.  Bias-add / ReLU stay in f32
    # (safe on v5e's f32-only VPU); activations are cast back to the compute
    # dtype (f32 or bf16) before feeding the next matmul.
    cdt = w1_ref.dtype
    x = x_ref[...].astype(cdt)          # VPU cast; avoids a wrapper-side cast op

    h = jnp.dot(x, w1_ref[...], preferred_element_type=jnp.float32) + b1_ref[...]
    h = jnp.maximum(h, 0.0).astype(cdt)

    h = jnp.dot(h, w2_ref[...], preferred_element_type=jnp.float32) + b2_ref[...]
    h = jnp.maximum(h, 0.0).astype(cdt)

    h = jnp.dot(h, w3_ref[...], preferred_element_type=jnp.float32) + b3_ref[...]
    h = jnp.maximum(h, 0.0).astype(cdt)

    q = jnp.dot(h, w4_ref[...], preferred_element_type=jnp.float32) + b4_ref[...]
    out_ref[...] = q.astype(out_ref.dtype)


def prepare_params(params, compute_dtype=jnp.bfloat16):
    """One-time parameter prep (call OUTSIDE the hot path / jitted forward):
    casts weights to the compute dtype and zero-pads the last layer's output
    columns to a lane-dense multiple of 128."""
    hidden = params["w1"].shape[1]
    n_actions = params["w4"].shape[1]
    n_pad = _round_up(n_actions, LANE)
    return {
        "w1": params["w1"].astype(compute_dtype),
        "w2": params["w2"].astype(compute_dtype),
        "w3": params["w3"].astype(compute_dtype),
        "w4": _pad2d(params["w4"], hidden, n_pad).astype(compute_dtype),
        # Biases stay f32: the bias-add/ReLU epilogue runs in f32 everywhere.
        "b1": params["b1"].astype(jnp.float32),
        "b2": params["b2"].astype(jnp.float32),
        "b3": params["b3"].astype(jnp.float32),
        "b4": _pad2d(params["b4"], 1, n_pad).astype(jnp.float32),
    }


@functools.partial(jax.jit, static_argnames=("n_actions", "block_b"))
def dqn_forward(x, prepared, *, n_actions, block_b=None):
    """x: [B, D_in] float32.  prepared: output of prepare_params().
    Returns Q-values [B, n_actions] in the compute dtype of `prepared`."""
    B, d_in = x.shape
    hidden = prepared["w1"].shape[1]
    n_pad = prepared["w4"].shape[1]
    cdt = prepared["w1"].dtype

    if block_b is None:
        # Two near-equal tiles for small/medium B -> even split across the two
        # v7x TensorCores; cap at 1024 rows so the MXU M-dim is full and
        # activations stay well inside VMEM on every generation.
        block_b = max(SUBLANE, min(1024, pl.cdiv(B, 2)))
    tb = _round_up(min(block_b, B), SUBLANE)
    num_tiles = pl.cdiv(B, tb)          # partial last block is clipped by Pallas

    # x / out are tiled over the batch grid axis; weights & biases use a
    # constant index_map so the pipeline keeps them VMEM-resident across every
    # batch tile (no re-DMA per step).
    x_spec = pl.BlockSpec((tb, d_in), lambda i: (i, 0))
    out_spec = pl.BlockSpec((tb, n_pad), lambda i: (i, 0))

    def _const_spec(a):
        return pl.BlockSpec(a.shape, lambda i: (0, 0))

    in_specs = [
        x_spec,
        _const_spec(prepared["w1"]), _const_spec(prepared["b1"]),
        _const_spec(prepared["w2"]), _const_spec(prepared["b2"]),
        _const_spec(prepared["w3"]), _const_spec(prepared["b3"]),
        _const_spec(prepared["w4"]), _const_spec(prepared["b4"]),
    ]

    # Advisory cost estimate with the true (unpadded) dims.
    flops = 2 * B * (d_in * hidden + 2 * hidden * hidden + hidden * n_pad)
    param_bytes = sum(prepared[k].size * prepared[k].dtype.itemsize
                      for k in ("w1", "b1", "w2", "b2", "w3", "b3", "w4", "b4"))
    bytes_accessed = (x.size * x.dtype.itemsize
                      + param_bytes
                      + B * n_pad * jnp.dtype(cdt).itemsize)

    q_padded = pl.pallas_call(
        dqn_kernel,
        out_shape=jax.ShapeDtypeStruct((B, n_pad), cdt),
        grid=(num_tiles,),
        in_specs=in_specs,
        out_specs=out_spec,
        compiler_params=pltpu.CompilerParams(
            # Batch tiles are independent -> megacore-shardable on v7x.
            dimension_semantics=("parallel",),
        ),
        cost_estimate=pl.CostEstimate(
            flops=flops, transcendentals=0, bytes_accessed=bytes_accessed),
    )(x,
      prepared["w1"], prepared["b1"],
      prepared["w2"], prepared["b2"],
      prepared["w3"], prepared["b3"],
      prepared["w4"], prepared["b4"])

    # Drop the zero-padded action columns (caller casts dtype if desired).
    return q_padded[:, :n_actions]


def init_dqn_params(key, input_shape, n_actions, hidden=128):
    """Deterministic init mimicking PyTorch's default Linear init
    (uniform +/- 1/sqrt(fan_in)).  Weights stored as [in, out]."""
    dims = [(input_shape, hidden), (hidden, hidden), (hidden, hidden),
            (hidden, n_actions)]
    params = {}
    for i, (fan_in, fan_out) in enumerate(dims, start=1):
        key, kw, kb = jax.random.split(key, 3)
        bound = 1.0 / (fan_in ** 0.5)
        params[f"w{i}"] = jax.random.uniform(
            kw, (fan_in, fan_out), jnp.float32, minval=-bound, maxval=bound)
        params[f"b{i}"] = jax.random.uniform(
            kb, (1, fan_out), jnp.float32, minval=-bound, maxval=bound)
    return params


def dqn_reference(x, params):
    """Pure-JAX reference for correctness check."""
    h = jnp.maximum(x @ params["w1"] + params["b1"], 0.0)
    h = jnp.maximum(h @ params["w2"] + params["b2"], 0.0)
    h = jnp.maximum(h @ params["w3"] + params["b3"], 0.0)
    return h @ params["w4"] + params["b4"]


# TODO(synk): replay buffer / target-network / epsilon-greedy / optimizer steps
# of the original DQN agent are training-loop logic, not part of the nn.Module
# forward pass, and are not implemented here.

if __name__ == "__main__":
    key = jax.random.PRNGKey(0)
    batch = 300          # deliberately NOT a multiple of the batch tile
    input_shape = 16     # observation/state vector size fed to DQN
    n_actions = 4

    key, kx, kp = jax.random.split(key, 3)
    x = jax.random.normal(kx, (batch, input_shape), jnp.float32)
    params = init_dqn_params(kp, input_shape, n_actions)

    q_ref = dqn_reference(x, params)

    # f32 compute path: must match the pure-JAX reference tightly.
    prep_f32 = prepare_params(params, compute_dtype=jnp.float32)
    q_f32 = jax.block_until_ready(dqn_forward(x, prep_f32, n_actions=n_actions))
    assert q_f32.shape == (batch, n_actions)
    assert q_f32.dtype == jnp.float32
    assert jnp.allclose(q_f32, q_ref, atol=1e-4, rtol=1e-4), "f32 mismatch vs reference"

    # bf16 weights/activations with f32 accumulation: the fast path on ALL
    # generations (v5e/v6e/v7x MXUs are natively bf16).  x is quantized to
    # bf16 in-kernel on top of weight quantization -- fine for DQN Q-values.
    prep_bf16 = prepare_params(params, compute_dtype=jnp.bfloat16)
    q_bf16 = jax.block_until_ready(dqn_forward(x, prep_bf16, n_actions=n_actions))
    assert q_bf16.shape == (batch, n_actions)
    q_bf16_f32 = q_bf16.astype(jnp.float32)
    assert jnp.all(jnp.isfinite(q_bf16_f32))
    assert jnp.allclose(q_bf16_f32, q_ref, atol=5e-2, rtol=5e-2), "bf16 mismatch vs reference"

    print("KERNEL_OK")
</pallas_src>

<mosaic_0001>
module attributes {stable_mosaic.version = 11 : i64} {
  func.func @dqn_kernel(%arg0: i32, %arg1: memref<152x16xf32, #tpu.memory_space<vmem>>, %arg2: memref<16x128xf32, #tpu.memory_space<vmem>>, %arg3: memref<1x128xf32, #tpu.memory_space<vmem>>, %arg4: memref<128x128xf32, #tpu.memory_space<vmem>>, %arg5: memref<1x128xf32, #tpu.memory_space<vmem>>, %arg6: memref<128x128xf32, #tpu.memory_space<vmem>>, %arg7: memref<1x128xf32, #tpu.memory_space<vmem>>, %arg8: memref<128x128xf32, #tpu.memory_space<vmem>>, %arg9: memref<1x128xf32, #tpu.memory_space<vmem>>, %arg10: memref<152x128xf32, #tpu.memory_space<vmem>>) attributes {dimension_semantics = [#tpu.dimension_semantics<parallel>], iteration_bounds = array<i64: 2>, scalar_prefetch = 0 : i64, scratch_operands = 0 : i64, tpu.core_type = #tpu.core_type<tc>, window_params = [{transform_indices = @transform_0, window_bounds = array<i64: 152, 16>}, {pipeline_mode = #tpu.pipeline_mode<synchronous>, transform_indices = @transform_1, window_bounds = array<i64: 16, 128>}, {pipeline_mode = #tpu.pipeline_mode<synchronous>, transform_indices = @transform_2, window_bounds = array<i64: 1, 128>}, {pipeline_mode = #tpu.pipeline_mode<synchronous>, transform_indices = @transform_3, window_bounds = array<i64: 128, 128>}, {pipeline_mode = #tpu.pipeline_mode<synchronous>, transform_indices = @transform_4, window_bounds = array<i64: 1, 128>}, {pipeline_mode = #tpu.pipeline_mode<synchronous>, transform_indices = @transform_5, window_bounds = array<i64: 128, 128>}, {pipeline_mode = #tpu.pipeline_mode<synchronous>, transform_indices = @transform_6, window_bounds = array<i64: 1, 128>}, {pipeline_mode = #tpu.pipeline_mode<synchronous>, transform_indices = @transform_7, window_bounds = array<i64: 128, 128>}, {pipeline_mode = #tpu.pipeline_mode<synchronous>, transform_indices = @transform_8, window_bounds = array<i64: 1, 128>}, {transform_indices = @transform_9, window_bounds = array<i64: 152, 128>}]} {
    %c0 = arith.constant 0 : index
    %c0_0 = arith.constant 0 : index
    %0 = vector.load %arg1[%c0, %c0_0] : memref<152x16xf32, #tpu.memory_space<vmem>>, vector<152x16xf32>
    %c0_1 = arith.constant 0 : index
    %c0_2 = arith.constant 0 : index
    %1 = vector.load %arg2[%c0_1, %c0_2] : memref<16x128xf32, #tpu.memory_space<vmem>>, vector<16x128xf32>
    %cst = arith.constant dense<0.000000e+00> : vector<152x128xf32>
    %2 = tpu.matmul %0, %1, %cst {dimension_numbers = #tpu.dot_dimension_numbers<[1], [0], [0], [1], [0, 0, 1, 1], [], []>} : vector<152x16xf32>, vector<16x128xf32>, vector<152x128xf32> -> vector<152x128xf32>
    %c0_3 = arith.constant 0 : index
    %c0_4 = arith.constant 0 : index
    %3 = vector.load %arg3[%c0_3, %c0_4] : memref<1x128xf32, #tpu.memory_space<vmem>>, vector<1x128xf32>
    %4 = vector.broadcast %3 : vector<1x128xf32> to vector<152x128xf32>
    %5 = arith.addf %2, %4 : vector<152x128xf32>
    %cst_5 = arith.constant 0.000000e+00 : f32
    %6 = vector.broadcast %cst_5 : f32 to vector<152x128xf32>
    %7 = arith.maximumf %5, %6 : vector<152x128xf32>
    %c0_6 = arith.constant 0 : index
    %c0_7 = arith.constant 0 : index
    %8 = vector.load %arg4[%c0_6, %c0_7] : memref<128x128xf32, #tpu.memory_space<vmem>>, vector<128x128xf32>
    %cst_8 = arith.constant dense<0.000000e+00> : vector<152x128xf32>
    %9 = tpu.matmul %7, %8, %cst_8 {dimension_numbers = #tpu.dot_dimension_numbers<[1], [0], [0], [1], [0, 0, 1, 1], [], []>} : vector<152x128xf32>, vector<128x128xf32>, vector<152x128xf32> -> vector<152x128xf32>
    %c0_9 = arith.constant 0 : index
    %c0_10 = arith.constant 0 : index
    %10 = vector.load %arg5[%c0_9, %c0_10] : memref<1x128xf32, #tpu.memory_space<vmem>>, vector<1x128xf32>
    %11 = vector.broadcast %10 : vector<1x128xf32> to vector<152x128xf32>
    %12 = arith.addf %9, %11 : vector<152x128xf32>
    %cst_11 = arith.constant 0.000000e+00 : f32
    %13 = vector.broadcast %cst_11 : f32 to vector<152x128xf32>
    %14 = arith.maximumf %12, %13 : vector<152x128xf32>
    %c0_12 = arith.constant 0 : index
    %c0_13 = arith.constant 0 : index
    %15 = vector.load %arg6[%c0_12, %c0_13] : memref<128x128xf32, #tpu.memory_space<vmem>>, vector<128x128xf32>
    %cst_14 = arith.constant dense<0.000000e+00> : vector<152x128xf32>
    %16 = tpu.matmul %14, %15, %cst_14 {dimension_numbers = #tpu.dot_dimension_numbers<[1], [0], [0], [1], [0, 0, 1, 1], [], []>} : vector<152x128xf32>, vector<128x128xf32>, vector<152x128xf32> -> vector<152x128xf32>
    %c0_15 = arith.constant 0 : index
    %c0_16 = arith.constant 0 : index
    %17 = vector.load %arg7[%c0_15, %c0_16] : memref<1x128xf32, #tpu.memory_space<vmem>>, vector<1x128xf32>
    %18 = vector.broadcast %17 : vector<1x128xf32> to vector<152x128xf32>
    %19 = arith.addf %16, %18 : vector<152x128xf32>
    %cst_17 = arith.constant 0.000000e+00 : f32
    %20 = vector.broadcast %cst_17 : f32 to vector<152x128xf32>
    %21 = arith.maximumf %19, %20 : vector<152x128xf32>
    %c0_18 = arith.constant 0 : index
    %c0_19 = arith.constant 0 : index
    %22 = vector.load %arg8[%c0_18, %c0_19] : memref<128x128xf32, #tpu.memory_space<vmem>>, vector<128x128xf32>
    %cst_20 = arith.constant dense<0.000000e+00> : vector<152x128xf32>
    %23 = tpu.matmul %21, %22, %cst_20 {dimension_numbers = #tpu.dot_dimension_numbers<[1], [0], [0], [1], [0, 0, 1, 1], [], []>} : vector<152x128xf32>, vector<128x128xf32>, vector<152x128xf32> -> vector<152x128xf32>
    %c0_21 = arith.constant 0 : index
    %c0_22 = arith.constant 0 : index
    %24 = vector.load %arg9[%c0_21, %c0_22] : memref<1x128xf32, #tpu.memory_space<vmem>>, vector<1x128xf32>
    %25 = vector.broadcast %24 : vector<1x128xf32> to vector<152x128xf32>
    %26 = arith.addf %23, %25 : vector<152x128xf32>
    %c0_23 = arith.constant 0 : index
    %c0_24 = arith.constant 0 : index
    %27 = vector.load %arg10[%c0_23, %c0_24] : memref<152x128xf32, #tpu.memory_space<vmem>>, vector<152x128xf32>
    tpu.vector_store %arg10[%c0_23, %c0_24], %26 {strides = array<i32>} : memref<152x128xf32, #tpu.memory_space<vmem>>, vector<152x128xf32>,
    return
  }
  func.func @transform_0(%arg0: i32) -> (i32, i32) {
    %c0_i32 = arith.constant 0 : i32
    %c0_i32_0 = arith.constant 0 : i32
    return %arg0, %c0_i32 : i32, i32
  }
  func.func @transform_1(%arg0: i32) -> (i32, i32) {
    %c0_i32 = arith.constant 0 : i32
    %c0_i32_0 = arith.constant 0 : i32
    %c0_i32_1 = arith.constant 0 : i32
    return %c0_i32, %c0_i32_0 : i32, i32
  }
  func.func @transform_2(%arg0: i32) -> (i32, i32) {
    %c0_i32 = arith.constant 0 : i32
    %c0_i32_0 = arith.constant 0 : i32
    %c0_i32_1 = arith.constant 0 : i32
    return %c0_i32, %c0_i32_0 : i32, i32
  }
  func.func @transform_3(%arg0: i32) -> (i32, i32) {
    %c0_i32 = arith.constant 0 : i32
    %c0_i32_0 = arith.constant 0 : i32
    %c0_i32_1 = arith.constant 0 : i32
    return %c0_i32, %c0_i32_0 : i32, i32
  }
  func.func @transform_4(%arg0: i32) -> (i32, i32) {
    %c0_i32 = arith.constant 0 : i32
    %c0_i32_0 = arith.constant 0 : i32
    %c0_i32_1 = arith.constant 0 : i32
    return %c0_i32, %c0_i32_0 : i32, i32
  }
  func.func @transform_5(%arg0: i32) -> (i32, i32) {
    %c0_i32 = arith.constant 0 : i32
    %c0_i32_0 = arith.constant 0 : i32
    %c0_i32_1 = arith.constant 0 : i32
    return %c0_i32, %c0_i32_0 : i32, i32
  }
  func.func @transform_6(%arg0: i32) -> (i32, i32) {
    %c0_i32 = arith.constant 0 : i32
    %c0_i32_0 = arith.constant 0 : i32
    %c0_i32_1 = arith.constant 0 : i32
    return %c0_i32, %c0_i32_0 : i32, i32
  }
  func.func @transform_7(%arg0: i32) -> (i32, i32) {
    %c0_i32 = arith.constant 0 : i32
    %c0_i32_0 = arith.constant 0 : i32
    %c0_i32_1 = arith.constant 0 : i32
    return %c0_i32, %c0_i32_0 : i32, i32
  }
  func.func @transform_8(%arg0: i32) -> (i32, i32) {
    %c0_i32 = arith.constant 0 : i32
    %c0_i32_0 = arith.constant 0 : i32
    %c0_i32_1 = arith.constant 0 : i32
    return %c0_i32, %c0_i32_0 : i32, i32
  }
  func.func @transform_9(%arg0: i32) -> (i32, i32) {
    %c0_i32 = arith.constant 0 : i32
    %c0_i32_0 = arith.constant 0 : i32
    return %arg0, %c0_i32 : i32, i32
  }
}

</mosaic_0001>

<bundles_post_ra>
// kernel: dqn_forward.1
= control target key start
LH: loop header
LB: loop body
LE: loop exit
PB: predicated region body
PF: predicated region fallthrough
CT: control target
= control target key end

     0   :  { %14 = vsyncpa [#allocation3], 0  ;;  %s1989_s30 = smov 0   ;;  %s2499_s0 = inlined_call_operand.vmem [shape: f32[300,16], index: 0, kind: input, shape index: {}]   ;;  %s2500_s1 = inlined_call_operand.vmem [shape: f32[16,128], index: 1, kind: input, shape index: {}]   ;;  %s2501_s2 = inlined_call_operand.vmem [shape: f32[1,128], index: 2, kind: input, shape index: {}]   ;;  %s2502_s3 = inlined_call_operand.vmem [shape: f32[128,128], index: 3, kind: input, shape index: {}]   ;;  %s2503_s4 = inlined_call_operand.vmem [shape: f32[1,128], index: 4, kind: input, shape index: {}]   ;;  %s2504_s5 = inlined_call_operand.vmem [shape: f32[128,128], index: 5, kind: input, shape index: {}]   ;;  %s2505_s6 = inlined_call_operand.vmem [shape: f32[1,128], index: 6, kind: input, shape index: {}]   ;;  %s2506_s7 = inlined_call_operand.hbm [shape: f32[128,128], index: 7, kind: input, shape index: {}]   ;;  %s2507_s8 = inlined_call_operand.vmem [shape: f32[1,128], index: 8, kind: input, shape index: {}]   ;;  %s2508_s9 = inlined_call_operand.vmem [shape: f32[300,128], index: 9, kind: output, shape index: {}]  }
   0x1 LB: > { %s1290_s10 = sadd.s32 4294967295, %s1931_s30   ;;  %p1292_p0 = scmp.ge.s32.totalorder %s1931_s30, 1  ;;  %s1931_s30 = sphi %s1989_s30, %s20_s30  }
   0x2   : > { %p245_p1 = scmp.lt.s32.totalorder %s1931_s30, 3  ;;  %s1933_s11 = smov [#allocation2]  }
   0x3   : > { %s275_s12 = sshll.u32 %s1933_s11, 4  ;;  %p2003_p3 = scmp.eq.s32.totalorder %s1290_s10, 0  ;;  %s276_s12 = int_to_ptr.vmem [resolvable:$true] %s275_s12 }
   0x4   : > { %p1997_p2 = pnand %p1292_p0, %p245_p1  ;;  %s1893_s18 = scalar_lea.hbm %s2506_s7, 2048 }
   0x5   : > { %s2513_s14 = scalar_select %p2003_p3, 1, 0 }
   0x6   : > { %s2512_s13 = scalar_select %p1997_p2, 1, 0 }
   0x7   : > { %p1873_p4 = pneg %p1997_p2  ;;  %p1894_p6 = scmp.ne.s32.totalorder %s2506_s7, %s1893_s18 }
   0x8   : > { %p1900_p10 = scmp.lt.u32.totalorder %s1893_s18, %s2506_s7 }
   0x9   : > { %p2011_p5 = pnand %p2003_p3, %p1873_p4 }
   0xb   : > { %p1895_p7 = pneg %p2011_p5 }
   0xd   : > { %p1896_p8 = pnand %p1895_p7, %p1894_p6 }
   0xf   : > { %p1897_p9 = pneg %p1896_p8 }
  0x11   : > { %p1902_p11 = pnand %p1900_p10, %p1897_p9 }
  0x13   : > { %1905 = shalt.err (!%p1902_p11)
}
  0x14   : > { %s1906_s23 = scalar_lea.vmem %s276_s12, 2048  ;;  %p1914_p1 = scmp.lt.s32.totalorder %s276_s12, %s276_s12 }
  0x15   : > { %p1907_p12 = scmp.ne.s32.totalorder %s276_s12, %s1906_s23  ;;  %p1915_p4 = scmp.lt.s32.totalorder %s1906_s23, %s1906_s23 }
  0x17   : > { %p1909_p13 = pnand %p1907_p12, %p1895_p7  ;;  %p1916_p3 = por %p1915_p4, %p1914_p1 }
  0x19   : > { %p1910_p0 = pneg %p1909_p13 }
  0x1b   : > { %p1917_p2 = pnand %p1916_p3, %p1910_p0 }
  0x1d   : > { %1920 = shalt.err (!%p1917_p2)
}
  0x1e   : > { %s1934_s24 = smov 128   ;;  %s1935_s25 = smov 8  }
  0x1f   : > { %1876 = dma.hbm_to_vmem [thread:$0]  (!%p2011_p5), %s2506_s7, 2048, %s276_s12, [#allocation3], %s1934_s24, %s1934_s24, %s1935_s25  }
  0x20   : > { %p2515_p6 = scmp.ne.s32.totalorder %s2512_s13, 0 }
  0x21   : > { %p2516_p8 = scmp.ne.s32.totalorder (!%p2515_p6), %s2513_s14, 0 }
  0x22   : > { %303 = sbr.rel (%p2515_p6) target bundleno = 985 (0x3d9), region = 56 }
  0x29   : > { %1926 = dma.done.wait (%p2516_p8), [#allocation3], 2048  }
  0x2a   : > { %1928 = vsyncadd (%p2516_p8), [#allocation3], 4294965248  ;;  %s339_s28 = smul.u32 19, %s1290_s10  ;;  %v1936_v0 = vmov 0.0|0.0   ;;  %vm1937_vm0 = vmmov 0   ;;  %v1938_v1 = vmov 0.0  }
  0x2b   : > { %1778 = vmatprep.subr.bf16.mxu0 %v1936_v0  ;;  %1454 = vmatprep.mubr.msk.f32.mxu0 %vm1937_vm0, %v1938_v1  ;;  %v370_v2 = vld [vmem:[%s2500_s1] sm:$0xff]  ;;  %v371_v3 = vld [vmem:[%s2500_s1 + $0x8] sm:$0xff]  ;;  %vm379_vm1 = vcmask 130048   ;;  %v618_v9 = vld [vmem:[%s2502_s3 + $0x10] sm:$0xff] }
  0x2c   : > { %p340_p2 = scmp.lt.s32.totalorder %s339_s28, 37  ;;  %1781 = vmatprep.subr.bf16.mxu1 %v1936_v0  ;;  %1543 = vmatprep.mubr.msk.f32.mxu1 %vm1937_vm0, %v1938_v1  ;;  %v1779_v4 = vpack.c.bf16 %v371_v3, %v370_v2  ;;  %v616_v6 = vld [vmem:[%s2502_s3] sm:$0xff]  ;;  %v617_v8 = vld [vmem:[%s2502_s3 + $0x8] sm:$0xff]  ;;  %v619_v11 = vld [vmem:[%s2502_s3 + $0x18] sm:$0xff] }
  0x2d   : > { %v1782_v10 = vpack.c.bf16 %v617_v8, %v616_v6  ;;  %v1785_v12 = vpack.c.bf16 %v619_v11, %v618_v9  ;;  %v620_v14 = vld [vmem:[%s2502_s3 + $0x20] sm:$0xff]  ;;  %v621_v15 = vld [vmem:[%s2502_s3 + $0x28] sm:$0xff]  ;;  %v622_v18 = vld [vmem:[%s2502_s3 + $0x30] sm:$0xff] }
  0x2e   : > { %s2518_s28 = smov (!%p340_p2, %s339_s28), 37  ;;  %1780 = vmatpush3.bf16.msra.mxu0 %v1779_v4  ;;  %v1788_v16 = vpack.c.bf16 %v621_v15, %v620_v14  ;;  %v623_v19 = vld [vmem:[%s2502_s3 + $0x38] sm:$0xff]  ;;  %v624_v22 = vld [vmem:[%s2502_s3 + $0x40] sm:$0xff]  ;;  %v625_v23 = vld [vmem:[%s2502_s3 + $0x48] sm:$0xff] }
  0x2f   : > { %s1297_s29 = sshll.u32 %s2518_s28, 3  ;;  %1805 = vmatprep.subr.bf16.mxu0 %v1936_v0  ;;  %1783 = vmatpush3.bf16.msra.mxu1 %v1782_v10  ;;  %v1791_v20 = vpack.c.bf16 %v623_v19, %v622_v18  ;;  %v1794_v24 = vpack.c.bf16 %v625_v23, %v624_v22  ;;  %v626_v26 = vld [vmem:[%s2502_s3 + $0x50] sm:$0xff]  ;;  %v627_v27 = vld [vmem:[%s2502_s3 + $0x58] sm:$0xff]  ;;  %v628_v30 = vld [vmem:[%s2502_s3 + $0x60] sm:$0xff] }
  0x30   : > { %s2059_s16 = scalar_lea.vmem %s2499_s0, %s1297_s29  ;;  %1784 = vmatprep.subr.bf16.mxu1 %v1936_v0  ;;  %v1797_v28 = vpack.c.bf16 %v627_v27, %v626_v26  ;;  %v629_v31 = vld [vmem:[%s2502_s3 + $0x68] sm:$0xff]  ;;  %v630_v45 = vld [vmem:[%s2502_s3 + $0x70] sm:$0xff]  ;;  %v631_v46 = vld [vmem:[%s2502_s3 + $0x78] sm:$0xff]  ;;  %s2456_s20 = scalar_lea.vmem %s2508_s9, %s1297_s29 }
  0x31   : > { %v351_v5 = vld [vmem:[%s2059_s16] sm:$0xff]  ;;  %v352_v7 = vld [vmem:[%s2059_s16 + $0x8] sm:$0xff]  ;;  %v353_v13 = vld [vmem:[%s2059_s16 + $0x10] sm:$0xff]  ;;  %v1800_v32 = vpack.c.bf16 %v629_v31, %v628_v30  ;;  %v1803_v47 = vpack.c.bf16 %v631_v46, %v630_v45 }
  0x32   : > { %1455 = vmatmul.mubr.msk.f32.vlgmr.msra.gmra.mrb[0].mxu0 %vm379_vm1, %v351_v5  ;;  %v354_v17 = vld [vmem:[%s2059_s16 + $0x18] sm:$0xff]  ;;  %v355_v21 = vld [vmem:[%s2059_s16 + $0x20] sm:$0xff]  ;;  %v356_v25 = vld [vmem:[%s2059_s16 + $0x28] sm:$0xff] }
  0x33   : > { %1457 = vmatprep.mubr.msk.f32.mxu0 %vm1937_vm0, %v1938_v1  ;;  %1786 = vmatpush3.bf16.msra.mxu1 %v1785_v12  ;;  %v357_v29 = vld [vmem:[%s2059_s16 + $0x30] sm:$0xff]  ;;  %v358_v33 = vld [vmem:[%s2059_s16 + $0x38] sm:$0xff]  ;;  %v359_v34 = vld [vmem:[%s2059_s16 + $0x40] sm:$0xff] }
  0x34   : > { %1787 = vmatprep.subr.bf16.mxu1 %v1936_v0  ;;  %v360_v35 = vld [vmem:[%s2059_s16 + $0x48] sm:$0xff]  ;;  %v361_v36 = vld [vmem:[%s2059_s16 + $0x50] sm:$0xff]  ;;  %v362_v37 = vld [vmem:[%s2059_s16 + $0x58] sm:$0xff] }
  0x35   : > { %v363_v38 = vld [vmem:[%s2059_s16 + $0x60] sm:$0xff]  ;;  %v364_v39 = vld [vmem:[%s2059_s16 + $0x68] sm:$0xff]  ;;  %v365_v40 = vld [vmem:[%s2059_s16 + $0x70] sm:$0xff] }
  0x36   : > { %1458 = vmatmul.mubr.msk.f32.gmra.mrb[2].mxu0 %vm379_vm1, %v352_v7  ;;  %v366_v41 = vld [vmem:[%s2059_s16 + $0x78] sm:$0xff]  ;;  %v367_v42 = vld [vmem:[%s2059_s16 + $0x80] sm:$0xff]  ;;  %v368_v43 = vld [vmem:[%s2059_s16 + $0x88] sm:$0xff] }
  0x37   : > { %1460 = vmatprep.mubr.msk.f32.mxu0 %vm1937_vm0, %v1938_v1  ;;  %1789 = vmatpush3.bf16.msra.mxu1 %v1788_v16  ;;  %v369_v44 = vld [vmem:[%s2059_s16 + $0x90] sm:$0xff]  ;;  %v818_v48 = vld [vmem:[%s2504_s5] sm:$0xff]  ;;  %v819_v49 = vld [vmem:[%s2504_s5 + $0x8] sm:$0xff] }
  0x38   : > { %1790 = vmatprep.subr.bf16.mxu1 %v1936_v0  ;;  %v820_v50 = vld [vmem:[%s2504_s5 + $0x10] sm:$0xff]  ;;  %v1806_v51 = vpack.c.bf16 %v819_v49, %v818_v48  ;;  %v821_v52 = vld [vmem:[%s2504_s5 + $0x18] sm:$0xff]  ;;  %v822_v54 = vld [vmem:[%s2504_s5 + $0x20] sm:$0xff] }
  0x39   : > { %v1809_v53 = vpack.c.bf16 %v821_v52, %v820_v50  ;;  %v823_v55 = vld [vmem:[%s2504_s5 + $0x28] sm:$0xff]  ;;  %v824_v57 = vld [vmem:[%s2504_s5 + $0x30] sm:$0xff]  ;;  %v825_v58 = vld [vmem:[%s2504_s5 + $0x38] sm:$0xff] }
  0x3a   : > { %1461 = vmatmul.mubr.msk.f32.gmra.mrb[4].mxu0 %vm379_vm1, %v353_v13  ;;  %v1812_v56 = vpack.c.bf16 %v823_v55, %v822_v54  ;;  %v1815_v59 = vpack.c.bf16 %v825_v58, %v824_v57  ;;  %v826_v60 = vld [vmem:[%s2504_s5 + $0x40] sm:$0xff]  ;;  %v827_v61 = vld [vmem:[%s2504_s5 + $0x48] sm:$0xff]  ;;  %v828_v63 = vld [vmem:[%s2504_s5 + $0x50] sm:$0xff] }
  0x3b   : > { %1463 = vmatprep.mubr.msk.f32.mxu0 %vm1937_vm0, %v1938_v1  ;;  %1792 = vmatpush3.bf16.msra.mxu1 %v1791_v20  ;;  %v1818_v62 = vpack.c.bf16 %v827_v61, %v826_v60  ;;  %v829_v2 = vld [vmem:[%s2504_s5 + $0x58] sm:$0xff]  ;;  %v830_v4 = vld [vmem:[%s2504_s5 + $0x60] sm:$0xff]  ;;  %v831_v5 = vld [vmem:[%s2504_s5 + $0x68] sm:$0xff] }
  0x3c   : > { %1793 = vmatprep.subr.bf16.mxu1 %v1936_v0  ;;  %1807 = vmatpush3.bf16.msra.mxu0 %v1806_v51  ;;  %v1821_v3 = vpack.c.bf16 %v829_v2, %v828_v63  ;;  %v1824_v6 = vpack.c.bf16 %v831_v5, %v830_v4  ;;  %v832_v7 = vld [vmem:[%s2504_s5 + $0x70] sm:$0xff]  ;;  %v833_v8 = vld [vmem:[%s2504_s5 + $0x78] sm:$0xff]  ;;  %v2253_v10 = vld [vmem:[%s2501_s2] ss:$0 sm:$0xff] }
  0x3d   : > { %1808 = vmatprep.subr.bf16.mxu0 %v1936_v0  ;;  %v1827_v9 = vpack.c.bf16 %v833_v8, %v832_v7 }
  0x3e   : > { %1464 = vmatmul.mubr.msk.f32.gmra.mrb[6].mxu0 %vm379_vm1, %v354_v17 }
  0x3f   : > { %1466 = vmatprep.mubr.msk.f32.mxu0 %vm1937_vm0, %v1938_v1  ;;  %1795 = vmatpush3.bf16.msra.mxu1 %v1794_v24 }
  0x40   : > { %1796 = vmatprep.subr.bf16.mxu1 %v1936_v0  ;;  %1810 = vmatpush3.bf16.msra.mxu0 %v1809_v53 }
  0x41   : > { %1811 = vmatprep.subr.bf16.mxu0 %v1936_v0 }
  0x42   : > { %1467 = vmatmul.mubr.msk.f32.gmra.mrb[8].mxu0 %vm379_vm1, %v355_v21 }
  0x43   : > { %1469 = vmatprep.mubr.msk.f32.mxu0 %vm1937_vm0, %v1938_v1  ;;  %1798 = vmatpush3.bf16.msra.mxu1 %v1797_v28 }
  0x44   : > { %1799 = vmatprep.subr.bf16.mxu1 %v1936_v0  ;;  %1813 = vmatpush3.bf16.msra.mxu0 %v1812_v56 }
  0x45   : > { %1814 = vmatprep.subr.bf16.mxu0 %v1936_v0 }
  0x46   : > { %1470 = vmatmul.mubr.msk.f32.gmra.mrb[10].mxu0 %vm379_vm1, %v356_v25 }
  0x47   : > { %1472 = vmatprep.mubr.msk.f32.mxu0 %vm1937_vm0, %v1938_v1  ;;  %1801 = vmatpush3.bf16.msra.mxu1 %v1800_v32 }
  0x48   : > { %1802 = vmatprep.subr.bf16.mxu1 %v1936_v0  ;;  %1816 = vmatpush3.bf16.msra.mxu0 %v1815_v59 }
  0x49   : > { %1817 = vmatprep.subr.bf16.mxu0 %v1936_v0 }
  0x4a   : > { %1473 = vmatmul.mubr.msk.f32.gmra.mrb[12].mxu0 %vm379_vm1, %v357_v29 }
  0x4b   : > { %1475 = vmatprep.mubr.msk.f32.mxu0 %vm1937_vm0, %v1938_v1  ;;  %1804 = vmatpush3.bf16.msra.mxu1 %v1803_v47 }
  0x4c   : > { %1853 = vmatprep.subr.bf16.mxu1 %v1936_v0  ;;  %1819 = vmatpush3.bf16.msra.mxu0 %v1818_v62 }
  0x4d   : > { %1820 = vmatprep.subr.bf16.mxu0 %v1936_v0 }
  0x4e   : > { %1476 = vmatmul.mubr.msk.f32.gmra.mrb[14].mxu0 %vm379_vm1, %v358_v33 }
  0x4f   : > { %1478 = vmatprep.mubr.msk.f32.mxu0 %vm1937_vm0, %v1938_v1 }
  0x50   : > { %1822 = vmatpush3.bf16.msra.mxu0 %v1821_v3 }
  0x51   : > { %1823 = vmatprep.subr.bf16.mxu0 %v1936_v0 }
  0x52   : > { %1479 = vmatmul.mubr.msk.f32.gmra.mrb[16].mxu0 %vm379_vm1, %v359_v34 }
  0x53   : > { %1481 = vmatprep.mubr.msk.f32.mxu0 %vm1937_vm0, %v1938_v1 }
  0x54   : > { %1825 = vmatpush3.bf16.msra.mxu0 %v1824_v6 }
  0x55   : > { %1826 = vmatprep.subr.bf16.mxu0 %v1936_v0 }
  0x56   : > { %1482 = vmatmul.mubr.msk.f32.gmra.mrb[18].mxu0 %vm379_vm1, %v360_v35 }
  0x57   : > { %1484 = vmatprep.mubr.msk.f32.mxu0 %vm1937_vm0, %v1938_v1 }
  0x58   : > { %1828 = vmatpush3.bf16.msra.mxu0 %v1827_v9 }
  0x59   : > { %1829 = vmatprep.subr.bf16.mxu0 %v1936_v0 }
  0x5a   : > { %1485 = vmatmul.mubr.msk.f32.gmra.mrb[20].mxu0 %vm379_vm1, %v361_v36 }
  0x5b   : > { %1487 = vmatprep.mubr.msk.f32.mxu0 %vm1937_vm0, %v1938_v1 }
  0x5e   : > { %1488 = vmatmul.mubr.msk.f32.gmra.mrb[22].mxu0 %vm379_vm1, %v362_v37 }
  0x5f   : > { %1490 = vmatprep.mubr.msk.f32.mxu0 %vm1937_vm0, %v1938_v1 }
  0x62   : > { %1491 = vmatmul.mubr.msk.f32.gmra.mrb[24].mxu0 %vm379_vm1, %v363_v38 }
  0x63   : > { %1493 = vmatprep.mubr.msk.f32.mxu0 %vm1937_vm0, %v1938_v1 }
  0x66   : > { %1494 = vmatmul.mubr.msk.f32.gmra.mrb[26].mxu0 %vm379_vm1, %v364_v39 }
  0x67   : > { %1496 = vmatprep.mubr.msk.f32.mxu0 %vm1937_vm0, %v1938_v1 }
  0x6a   : > { %1497 = vmatmul.mubr.msk.f32.gmra.mrb[28].mxu0 %vm379_vm1, %v365_v40 }
  0x6b   : > { %1499 = vmatprep.mubr.msk.f32.mxu0 %vm1937_vm0, %v1938_v1 }
  0x6e   : > { %1500 = vmatmul.mubr.msk.f32.gmra.mrb[30].mxu0 %vm379_vm1, %v366_v41 }
  0x6f   : > { %1502 = vmatprep.mubr.msk.f32.mxu0 %vm1937_vm0, %v1938_v1 }
  0x72   : > { %1503 = vmatmul.mubr.msk.f32.gmra.mrb[32].mxu0 %vm379_vm1, %v367_v42 }
  0x73   : > { %1505 = vmatprep.mubr.msk.f32.mxu0 %vm1937_vm0, %v1938_v1 }
  0x76   : > { %1506 = vmatmul.mubr.msk.f32.gmra.mrb[34].mxu0 %vm379_vm1, %v368_v43 }
  0x77   : > { %1508 = vmatprep.mubr.msk.f32.mxu0 %vm1937_vm0, %v1938_v1 }
  0x7a   : > { %1509 = vmatmul.mubr.msk.f32.gmra.mrb[36].mxu0 %vm379_vm1, %v369_v44 }
  0x7b   : > { %1632 = vmatprep.mubr.msk.f32.mxu0 %vm1937_vm0, %v1938_v1 }
 0x105   : > { %v503_v11 = vpop.f32.mrb[0].mxu0 }
 0x106   : > { %v504_v12 = vadd.f32 %v2253_v10, %v503_v11  ;;  %v1456_v13 = vpop.f32.mrb[1].mxu0 }
 0x108   : > { %v597_v14 = vmax.f32 %v504_v12, 0.0 }
 0x109   : > { %v508_v15 = vpop.f32.mrb[2].mxu0 }
 0x10a   : > { %v509_v16 = vadd.f32 %v2253_v10, %v508_v15  ;;  %v1459_v17 = vpop.f32.mrb[3].mxu0  ;;  %1544 = vmatmul.mubr.f32.vlgmr.msra.gmra.mrb[0].mxu1 %v597_v14 }
 0x10b   : > { %1546 = vmatprep.mubr.msk.f32.mxu1 %vm1937_vm0, %v1938_v1 }
 0x10c   : > { %v598_v18 = vmax.f32 %v509_v16, 0.0 }
 0x10d   : > { %v513_v19 = vpop.f32.mrb[4].mxu0 }
 0x10e   : > { %v514_v20 = vadd.f32 %v2253_v10, %v513_v19  ;;  %v1462_v21 = vpop.f32.mrb[5].mxu0  ;;  %1547 = vmatmul.mubr.f32.gmra.mrb[2].mxu1 %v598_v18 }
 0x10f   : > { %1549 = vmatprep.mubr.msk.f32.mxu1 %vm1937_vm0, %v1938_v1 }
 0x110   : > { %v599_v22 = vmax.f32 %v514_v20, 0.0 }
 0x111   : > { %v518_v23 = vpop.f32.mrb[6].mxu0 }
 0x112   : > { %v519_v24 = vadd.f32 %v2253_v10, %v518_v23  ;;  %v1465_v25 = vpop.f32.mrb[7].mxu0  ;;  %1550 = vmatmul.mubr.f32.gmra.mrb[4].mxu1 %v599_v22 }
 0x113   : > { %1552 = vmatprep.mubr.msk.f32.mxu1 %vm1937_vm0, %v1938_v1 }
 0x114   : > { %v600_v26 = vmax.f32 %v519_v24, 0.0 }
 0x115   : > { %v523_v27 = vpop.f32.mrb[8].mxu0 }
 0x116   : > { %v524_v28 = vadd.f32 %v2253_v10, %v523_v27  ;;  %v1468_v29 = vpop.f32.mrb[9].mxu0  ;;  %1553 = vmatmul.mubr.f32.gmra.mrb[6].mxu1 %v600_v26  ;;  %v1020_v26 = vld [vmem:[#allocation2] sm:$0xff]  ;;  %v1021_v27 = vld [vmem:[#allocation2 + $0x8] sm:$0xff] }
 0x117   : > { %1555 = vmatprep.mubr.msk.f32.mxu1 %vm1937_vm0, %v1938_v1  ;;  %v1022_v29 = vld [vmem:[#allocation2 + $0x10] sm:$0xff] }
 0x118   : > { %v601_v30 = vmax.f32 %v524_v28, 0.0  ;;  %v1830_v28 = vpack.c.bf16 %v1021_v27, %v1020_v26 }
 0x119   : > { %v528_v31 = vpop.f32.mrb[10].mxu0 }
 0x11a   : > { %v529_v32 = vadd.f32 %v2253_v10, %v528_v31  ;;  %v1471_v33 = vpop.f32.mrb[11].mxu0  ;;  %1556 = vmatmul.mubr.f32.gmra.mrb[8].mxu1 %v601_v30  ;;  %v1023_v30 = vld [vmem:[#allocation2 + $0x18] sm:$0xff] }
 0x11b   : > { %1558 = vmatprep.mubr.msk.f32.mxu1 %vm1937_vm0, %v1938_v1  ;;  %1861 = vmatpush3.bf16.msra.mxu1 %v1830_v28  ;;  %v1833_v31 = vpack.c.bf16 %v1023_v30, %v1022_v29 }
 0x11c   : > { %v602_v34 = vmax.f32 %v529_v32, 0.0  ;;  %1854 = vmatprep.subr.bf16.mxu1 %v1936_v0  ;;  %v1025_v32 = vld [vmem:[#allocation2 + $0x28] sm:$0xff] }
 0x11d   : > { %v533_v35 = vpop.f32.mrb[12].mxu0 }
 0x11e   : > { %v534_v36 = vadd.f32 %v2253_v10, %v533_v35  ;;  %v1474_v37 = vpop.f32.mrb[13].mxu0  ;;  %1559 = vmatmul.mubr.f32.gmra.mrb[10].mxu1 %v602_v34  ;;  %v1026_v34 = vld [vmem:[#allocation2 + $0x30] sm:$0xff]  ;;  %v1027_v35 = vld [vmem:[#allocation2 + $0x38] sm:$0xff] }
 0x11f   : > { %1561 = vmatprep.mubr.msk.f32.mxu1 %vm1937_vm0, %v1938_v1  ;;  %1862 = vmatpush3.bf16.msra.mxu1 %v1833_v31  ;;  %v1028_v37 = vld [vmem:[#allocation2 + $0x40] sm:$0xff] }
 0x120   : > { %v603_v38 = vmax.f32 %v534_v36, 0.0  ;;  %1855 = vmatprep.subr.bf16.mxu1 %v1936_v0  ;;  %v1839_v36 = vpack.c.bf16 %v1027_v35, %v1026_v34 }
 0x121   : > { %v538_v39 = vpop.f32.mrb[14].mxu0 }
 0x122   : > { %v539_v40 = vadd.f32 %v2253_v10, %v538_v39  ;;  %v1477_v41 = vpop.f32.mrb[15].mxu0  ;;  %1562 = vmatmul.mubr.f32.gmra.mrb[12].mxu1 %v603_v38  ;;  %v1029_v38 = vld [vmem:[#allocation2 + $0x48] sm:$0xff] }
 0x123   : > { %1564 = vmatprep.mubr.msk.f32.mxu1 %vm1937_vm0, %v1938_v1  ;;  %v1842_v39 = vpack.c.bf16 %v1029_v38, %v1028_v37  ;;  %v1031_v41 = vld [vmem:[#allocation2 + $0x58] sm:$0xff] }
 0x124   : > { %v604_v42 = vmax.f32 %v539_v40, 0.0  ;;  %v1030_v40 = vld [vmem:[#allocation2 + $0x50] sm:$0xff] }
 0x125   : > { %v543_v43 = vpop.f32.mrb[16].mxu0 }
 0x126   : > { %v544_v44 = vadd.f32 %v2253_v10, %v543_v43  ;;  %v1480_v45 = vpop.f32.mrb[17].mxu0  ;;  %1565 = vmatmul.mubr.f32.gmra.mrb[14].mxu1 %v604_v42  ;;  %v1845_v42 = vpack.c.bf16 %v1031_v41, %v1030_v40  ;;  %v1032_v43 = vld [vmem:[#allocation2 + $0x60] sm:$0xff] }
 0x127   : > { %1567 = vmatprep.mubr.msk.f32.mxu1 %vm1937_vm0, %v1938_v1 }
 0x128   : > { %v605_v46 = vmax.f32 %v544_v44, 0.0  ;;  %v1033_v44 = vld [vmem:[#allocation2 + $0x68] sm:$0xff] }
 0x129   : > { %v548_v47 = vpop.f32.mrb[18].mxu0  ;;  %v1848_v45 = vpack.c.bf16 %v1033_v44, %v1032_v43 }
 0x12a   : > { %v549_v48 = vadd.f32 %v2253_v10, %v548_v47  ;;  %v1483_v49 = vpop.f32.mrb[19].mxu0  ;;  %1568 = vmatmul.mubr.f32.gmra.mrb[16].mxu1 %v605_v46  ;;  %v2322_v46 = vld [vmem:[%s2503_s4] ss:$0 sm:$0xff] }
 0x12b   : > { %1570 = vmatprep.mubr.msk.f32.mxu1 %vm1937_vm0, %v1938_v1 }
 0x12c   : > { %v606_v50 = vmax.f32 %v549_v48, 0.0 }
 0x12d   : > { %v553_v51 = vpop.f32.mrb[20].mxu0 }
 0x12e   : > { %v554_v52 = vadd.f32 %v2253_v10, %v553_v51  ;;  %v1486_v53 = vpop.f32.mrb[21].mxu0  ;;  %1571 = vmatmul.mubr.f32.gmra.mrb[18].mxu1 %v606_v50 }
 0x12f   : > { %1573 = vmatprep.mubr.msk.f32.mxu1 %vm1937_vm0, %v1938_v1 }
 0x130   : > { %v607_v54 = vmax.f32 %v554_v52, 0.0 }
 0x131   : > { %v558_v55 = vpop.f32.mrb[22].mxu0 }
 0x132   : > { %v559_v56 = vadd.f32 %v2253_v10, %v558_v55  ;;  %v1489_v57 = vpop.f32.mrb[23].mxu0  ;;  %1574 = vmatmul.mubr.f32.gmra.mrb[20].mxu1 %v607_v54 }
 0x133   : > { %1576 = vmatprep.mubr.msk.f32.mxu1 %vm1937_vm0, %v1938_v1 }
 0x134   : > { %v608_v58 = vmax.f32 %v559_v56, 0.0 }
 0x135   : > { %v563_v59 = vpop.f32.mrb[24].mxu0 }
 0x136   : > { %v564_v60 = vadd.f32 %v2253_v10, %v563_v59  ;;  %v1492_v61 = vpop.f32.mrb[25].mxu0  ;;  %1577 = vmatmul.mubr.f32.gmra.mrb[22].mxu1 %v608_v58 }
 0x137   : > { %1579 = vmatprep.mubr.msk.f32.mxu1 %vm1937_vm0, %v1938_v1 }
 0x138   : > { %v609_v62 = vmax.f32 %v564_v60, 0.0 }
 0x139   : > { %v568_v63 = vpop.f32.mrb[26].mxu0 }
 0x13a   : > { %v569_v2 = vadd.f32 %v2253_v10, %v568_v63  ;;  %v1495_v3 = vpop.f32.mrb[27].mxu0  ;;  %1580 = vmatmul.mubr.f32.gmra.mrb[24].mxu1 %v609_v62 }
 0x13b   : > { %1582 = vmatprep.mubr.msk.f32.mxu1 %vm1937_vm0, %v1938_v1 }
 0x13c   : > { %v610_v4 = vmax.f32 %v569_v2, 0.0 }
 0x13d   : > { %v573_v5 = vpop.f32.mrb[28].mxu0 }
 0x13e   : > { %v574_v6 = vadd.f32 %v2253_v10, %v573_v5  ;;  %v1498_v7 = vpop.f32.mrb[29].mxu0  ;;  %1583 = vmatmul.mubr.f32.gmra.mrb[26].mxu1 %v610_v4 }
 0x13f   : > { %1585 = vmatprep.mubr.msk.f32.mxu1 %vm1937_vm0, %v1938_v1 }
 0x140   : > { %v611_v8 = vmax.f32 %v574_v6, 0.0 }
 0x141   : > { %v578_v9 = vpop.f32.mrb[30].mxu0 }
 0x142   : > { %v579_v11 = vadd.f32 %v2253_v10, %v578_v9  ;;  %v1501_v12 = vpop.f32.mrb[31].mxu0  ;;  %1586 = vmatmul.mubr.f32.gmra.mrb[28].mxu1 %v611_v8 }
 0x143   : > { %1588 = vmatprep.mubr.msk.f32.mxu1 %vm1937_vm0, %v1938_v1 }
 0x144   : > { %v612_v13 = vmax.f32 %v579_v11, 0.0 }
 0x145   : > { %v583_v14 = vpop.f32.mrb[32].mxu0 }
 0x146   : > { %v584_v15 = vadd.f32 %v2253_v10, %v583_v14  ;;  %v1504_v16 = vpop.f32.mrb[33].mxu0  ;;  %1589 = vmatmul.mubr.f32.gmra.mrb[30].mxu1 %v612_v13 }
 0x147   : > { %1591 = vmatprep.mubr.msk.f32.mxu1 %vm1937_vm0, %v1938_v1 }
 0x148   : > { %v613_v17 = vmax.f32 %v584_v15, 0.0 }
 0x149   : > { %v588_v18 = vpop.f32.mrb[34].mxu0 }
 0x14a   : > { %v589_v19 = vadd.f32 %v2253_v10, %v588_v18  ;;  %v1507_v20 = vpop.f32.mrb[35].mxu0  ;;  %1592 = vmatmul.mubr.f32.gmra.mrb[32].mxu1 %v613_v17 }
 0x14b   : > { %1594 = vmatprep.mubr.msk.f32.mxu1 %vm1937_vm0, %v1938_v1 }
 0x14c   : > { %v614_v21 = vmax.f32 %v589_v19, 0.0 }
 0x14d   : > { %v593_v22 = vpop.f32.mrb[36].mxu0 }
 0x14e   : > { %v594_v23 = vadd.f32 %v2253_v10, %v593_v22  ;;  %v1510_v24 = vpop.f32.mrb[37].mxu0  ;;  %1595 = vmatmul.mubr.f32.gmra.mrb[34].mxu1 %v614_v21  ;;  %v1024_v10 = vld [vmem:[#allocation2 + $0x20] sm:$0xff] }
 0x14f   : > { %1597 = vmatprep.mubr.msk.f32.mxu1 %vm1937_vm0, %v1938_v1  ;;  %v1836_v33 = vpack.c.bf16 %v1025_v32, %v1024_v10 }
 0x150   : > { %v615_v25 = vmax.f32 %v594_v23, 0.0 }
 0x151   : > { %1863 = vmatpush3.bf16.msra.mxu1 %v1836_v33 }
 0x152   : > { %1598 = vmatmul.mubr.f32.gmra.mrb[36].mxu1 %v615_v25  ;;  %1856 = vmatprep.subr.bf16.mxu1 %v1936_v0 }
 0x153   : > { %1730 = vmatprep.mubr.msk.f32.mxu1 %vm1937_vm0, %v1938_v1 }
 0x155   : > { %1864 = vmatpush3.bf16.msra.mxu1 %v1839_v36 }
 0x156   : > { %1857 = vmatprep.subr.bf16.mxu1 %v1936_v0 }
 0x159   : > { %1865 = vmatpush3.bf16.msra.mxu1 %v1842_v39 }
 0x15a   : > { %1858 = vmatprep.subr.bf16.mxu1 %v1936_v0 }
 0x15d   : > { %1866 = vmatpush3.bf16.msra.mxu1 %v1845_v42 }
 0x15e   : > { %1859 = vmatprep.subr.bf16.mxu1 %v1936_v0 }
 0x161   : > { %1867 = vmatpush3.bf16.msra.mxu1 %v1848_v45 }
 0x162   : > { %1860 = vmatprep.subr.bf16.mxu1 %v1936_v0 }
 0x1dd   : > { %v705_v47 = vpop.f32.mrb[0].mxu1 }
 0x1de   : > { %v706_v48 = vadd.f32 %v2322_v46, %v705_v47  ;;  %v1545_v49 = vpop.f32.mrb[1].mxu1 }
 0x1e0   : > { %v799_v50 = vmax.f32 %v706_v48, 0.0 }
 0x1e1   : > { %v710_v51 = vpop.f32.mrb[2].mxu1 }
 0x1e2   : > { %v711_v52 = vadd.f32 %v2322_v46, %v710_v51  ;;  %v1548_v53 = vpop.f32.mrb[3].mxu1  ;;  %1633 = vmatmul.mubr.f32.vlgmr.msra.gmra.mrb[38].mxu0 %v799_v50 }
 0x1e3   : > { %1635 = vmatprep.mubr.msk.f32.mxu0 %vm1937_vm0, %v1938_v1  ;;  %1831 = vmatpush3.bf16.msra.mxu0 %v1830_v28 }
 0x1e4   : > { %v800_v54 = vmax.f32 %v711_v52, 0.0  ;;  %1832 = vmatprep.subr.bf16.mxu0 %v1936_v0 }
 0x1e5   : > { %v715_v55 = vpop.f32.mrb[4].mxu1 }
 0x1e6   : > { %v716_v56 = vadd.f32 %v2322_v46, %v715_v55  ;;  %v1551_v57 = vpop.f32.mrb[5].mxu1  ;;  %1636 = vmatmul.mubr.f32.gmra.mrb[40].mxu0 %v800_v54 }
 0x1e7   : > { %1638 = vmatprep.mubr.msk.f32.mxu0 %vm1937_vm0, %v1938_v1  ;;  %1834 = vmatpush3.bf16.msra.mxu0 %v1833_v31 }
 0x1e8   : > { %v801_v58 = vmax.f32 %v716_v56, 0.0  ;;  %1835 = vmatprep.subr.bf16.mxu0 %v1936_v0 }
 0x1e9   : > { %v720_v59 = vpop.f32.mrb[6].mxu1 }
 0x1ea   : > { %v721_v60 = vadd.f32 %v2322_v46, %v720_v59  ;;  %v1554_v61 = vpop.f32.mrb[7].mxu1  ;;  %1639 = vmatmul.mubr.f32.gmra.mrb[42].mxu0 %v801_v58 }
 0x1eb   : > { %1641 = vmatprep.mubr.msk.f32.mxu0 %vm1937_vm0, %v1938_v1  ;;  %1837 = vmatpush3.bf16.msra.mxu0 %v1836_v33  ;;  %v1034_v61 = vld [vmem:[#allocation2 + $0x70] sm:$0xff] }
 0x1ec   : > { %v802_v62 = vmax.f32 %v721_v60, 0.0  ;;  %1838 = vmatprep.subr.bf16.mxu0 %v1936_v0 }
 0x1ed   : > { %v725_v63 = vpop.f32.mrb[8].mxu1 }
 0x1ee   : > { %v726_v2 = vadd.f32 %v2322_v46, %v725_v63  ;;  %v1557_v3 = vpop.f32.mrb[9].mxu1  ;;  %1642 = vmatmul.mubr.f32.gmra.mrb[44].mxu0 %v802_v62  ;;  %v1035_v62 = vld [vmem:[#allocation2 + $0x78] sm:$0xff] }
 0x1ef   : > { %1644 = vmatprep.mubr.msk.f32.mxu0 %vm1937_vm0, %v1938_v1  ;;  %1840 = vmatpush3.bf16.msra.mxu0 %v1839_v36  ;;  %v1851_v63 = vpack.c.bf16 %v1035_v62, %v1034_v61 }
 0x1f0   : > { %v803_v4 = vmax.f32 %v726_v2, 0.0  ;;  %1841 = vmatprep.subr.bf16.mxu0 %v1936_v0  ;;  %v2391_v2 = vld [vmem:[%s2505_s6] ss:$0 sm:$0xff] }
 0x1f1   : > { %v730_v5 = vpop.f32.mrb[10].mxu1  ;;  %1868 = vmatpush3.bf16.msra.mxu1 %v1851_v63 }
 0x1f2   : > { %v731_v6 = vadd.f32 %v2322_v46, %v730_v5  ;;  %v1560_v7 = vpop.f32.mrb[11].mxu1  ;;  %1645 = vmatmul.mubr.f32.gmra.mrb[46].mxu0 %v803_v4 }
 0x1f3   : > { %1647 = vmatprep.mubr.msk.f32.mxu0 %vm1937_vm0, %v1938_v1  ;;  %1843 = vmatpush3.bf16.msra.mxu0 %v1842_v39 }
 0x1f4   : > { %v804_v8 = vmax.f32 %v731_v6, 0.0  ;;  %1844 = vmatprep.subr.bf16.mxu0 %v1936_v0 }
 0x1f5   : > { %v735_v9 = vpop.f32.mrb[12].mxu1 }
 0x1f6   : > { %v736_v11 = vadd.f32 %v2322_v46, %v735_v9  ;;  %v1563_v12 = vpop.f32.mrb[13].mxu1  ;;  %1648 = vmatmul.mubr.f32.gmra.mrb[48].mxu0 %v804_v8 }
 0x1f7   : > { %1650 = vmatprep.mubr.msk.f32.mxu0 %vm1937_vm0, %v1938_v1  ;;  %1846 = vmatpush3.bf16.msra.mxu0 %v1845_v42 }
 0x1f8   : > { %v805_v13 = vmax.f32 %v736_v11, 0.0  ;;  %1847 = vmatprep.subr.bf16.mxu0 %v1936_v0 }
 0x1f9   : > { %v740_v14 = vpop.f32.mrb[14].mxu1 }
 0x1fa   : > { %v741_v15 = vadd.f32 %v2322_v46, %v740_v14  ;;  %v1566_v16 = vpop.f32.mrb[15].mxu1  ;;  %1651 = vmatmul.mubr.f32.gmra.mrb[50].mxu0 %v805_v13 }
 0x1fb   : > { %1653 = vmatprep.mubr.msk.f32.mxu0 %vm1937_vm0, %v1938_v1  ;;  %1849 = vmatpush3.bf16.msra.mxu0 %v1848_v45 }
 0x1fc   : > { %v806_v17 = vmax.f32 %v741_v15, 0.0  ;;  %1850 = vmatprep.subr.bf16.mxu0 %v1936_v0 }
 0x1fd   : > { %v745_v18 = vpop.f32.mrb[16].mxu1 }
 0x1fe   : > { %v746_v19 = vadd.f32 %v2322_v46, %v745_v18  ;;  %v1569_v20 = vpop.f32.mrb[17].mxu1  ;;  %1654 = vmatmul.mubr.f32.gmra.mrb[52].mxu0 %v806_v17 }
 0x1ff   : > { %1656 = vmatprep.mubr.msk.f32.mxu0 %vm1937_vm0, %v1938_v1  ;;  %1852 = vmatpush3.bf16.msra.mxu0 %v1851_v63 }
 0x200   : > { %v807_v21 = vmax.f32 %v746_v19, 0.0 }
 0x201   : > { %v750_v22 = vpop.f32.mrb[18].mxu1 }
 0x202   : > { %v751_v23 = vadd.f32 %v2322_v46, %v750_v22  ;;  %v1572_v24 = vpop.f32.mrb[19].mxu1  ;;  %1657 = vmatmul.mubr.f32.gmra.mrb[54].mxu0 %v807_v21 }
 0x203   : > { %1659 = vmatprep.mubr.msk.f32.mxu0 %vm1937_vm0, %v1938_v1 }
 0x204   : > { %v808_v25 = vmax.f32 %v751_v23, 0.0 }
 0x205   : > { %v755_v26 = vpop.f32.mrb[20].mxu1 }
 0x206   : > { %v756_v0 = vadd.f32 %v2322_v46, %v755_v26  ;;  %v1575_v27 = vpop.f32.mrb[21].mxu1  ;;  %1660 = vmatmul.mubr.f32.gmra.mrb[56].mxu0 %v808_v25 }
 0x207   : > { %1662 = vmatprep.mubr.msk.f32.mxu0 %vm1937_vm0, %v1938_v1 }
 0x208   : > { %v809_v28 = vmax.f32 %v756_v0, 0.0 }
 0x209   : > { %v760_v29 = vpop.f32.mrb[22].mxu1 }
 0x20a   : > { %v761_v30 = vadd.f32 %v2322_v46, %v760_v29  ;;  %v1578_v31 = vpop.f32.mrb[23].mxu1  ;;  %1663 = vmatmul.mubr.f32.gmra.mrb[58].mxu0 %v809_v28 }
 0x20b   : > { %1665 = vmatprep.mubr.msk.f32.mxu0 %vm1937_vm0, %v1938_v1 }
 0x20c   : > { %v810_v10 = vmax.f32 %v761_v30, 0.0 }
 0x20d   : > { %v765_v32 = vpop.f32.mrb[24].mxu1 }
 0x20e   : > { %v766_v33 = vadd.f32 %v2322_v46, %v765_v32  ;;  %v1581_v34 = vpop.f32.mrb[25].mxu1  ;;  %1666 = vmatmul.mubr.f32.gmra.mrb[60].mxu0 %v810_v10 }
 0x20f   : > { %1668 = vmatprep.mubr.msk.f32.mxu0 %vm1937_vm0, %v1938_v1 }
 0x210   : > { %v811_v35 = vmax.f32 %v766_v33, 0.0 }
 0x211   : > { %v770_v36 = vpop.f32.mrb[26].mxu1 }
 0x212   : > { %v771_v37 = vadd.f32 %v2322_v46, %v770_v36  ;;  %v1584_v38 = vpop.f32.mrb[27].mxu1  ;;  %1669 = vmatmul.mubr.f32.gmra.mrb[62].mxu0 %v811_v35 }
 0x213   : > { %1671 = vmatprep.mubr.msk.f32.mxu0 %vm1937_vm0, %v1938_v1 }
 0x214   : > { %v812_v39 = vmax.f32 %v771_v37, 0.0 }
 0x215   : > { %v775_v40 = vpop.f32.mrb[28].mxu1 }
 0x216   : > { %v776_v41 = vadd.f32 %v2322_v46, %v775_v40  ;;  %v1587_v42 = vpop.f32.mrb[29].mxu1  ;;  %1672 = vmatmul.mubr.f32.gmra.mrb[64].mxu0 %v812_v39 }
 0x217   : > { %1674 = vmatprep.mubr.msk.f32.mxu0 %vm1937_vm0, %v1938_v1 }
 0x218   : > { %v813_v43 = vmax.f32 %v776_v41, 0.0 }
 0x219   : > { %v780_v44 = vpop.f32.mrb[30].mxu1 }
 0x21a   : > { %v781_v45 = vadd.f32 %v2322_v46, %v780_v44  ;;  %v1590_v47 = vpop.f32.mrb[31].mxu1  ;;  %1675 = vmatmul.mubr.f32.gmra.mrb[66].mxu0 %v813_v43 }
 0x21b   : > { %1677 = vmatprep.mubr.msk.f32.mxu0 %vm1937_vm0, %v1938_v1 }
 0x21c   : > { %v814_v48 = vmax.f32 %v781_v45, 0.0 }
 0x21d   : > { %v785_v49 = vpop.f32.mrb[32].mxu1 }
 0x21e   : > { %v786_v50 = vadd.f32 %v2322_v46, %v785_v49  ;;  %v1593_v51 = vpop.f32.mrb[33].mxu1  ;;  %1678 = vmatmul.mubr.f32.gmra.mrb[68].mxu0 %v814_v48 }
 0x21f   : > { %1680 = vmatprep.mubr.msk.f32.mxu0 %vm1937_vm0, %v1938_v1 }
 0x220   : > { %v815_v52 = vmax.f32 %v786_v50, 0.0 }
 0x221   : > { %v790_v53 = vpop.f32.mrb[34].mxu1 }
 0x222   : > { %v791_v54 = vadd.f32 %v2322_v46, %v790_v53  ;;  %v1596_v55 = vpop.f32.mrb[35].mxu1  ;;  %1681 = vmatmul.mubr.f32.gmra.mrb[70].mxu0 %v815_v52 }
 0x223   : > { %1683 = vmatprep.mubr.msk.f32.mxu0 %vm1937_vm0, %v1938_v1 }
 0x224   : > { %v816_v56 = vmax.f32 %v791_v54, 0.0 }
 0x225   : > { %v795_v57 = vpop.f32.mrb[36].mxu1 }
 0x226   : > { %v796_v58 = vadd.f32 %v2322_v46, %v795_v57  ;;  %v1599_v59 = vpop.f32.mrb[37].mxu1  ;;  %1684 = vmatmul.mubr.f32.gmra.mrb[72].mxu0 %v816_v56 }
 0x227   : > { %1686 = vmatprep.mubr.msk.f32.mxu0 %vm1937_vm0, %v1938_v1 }
 0x228   : > { %v817_v60 = vmax.f32 %v796_v58, 0.0 }
 0x22a   : > { %1687 = vmatmul.mubr.f32.gmra.mrb[74].mxu0 %v817_v60 }
 0x22b   : > { %1721 = vmatprep.mubr.msk.f32.mxu0 %vm1937_vm0, %v1938_v1 }
 0x2b5   : > { %v907_v46 = vpop.f32.mrb[38].mxu0 }
 0x2b6   : > { %v908_v3 = vadd.f32 %v2391_v2, %v907_v46  ;;  %v1634_v4 = vpop.f32.mrb[39].mxu0 }
 0x2b8   : > { %v1001_v5 = vmax.f32 %v908_v3, 0.0 }
 0x2b9   : > { %v912_v6 = vpop.f32.mrb[40].mxu0 }
 0x2ba   : > { %v913_v7 = vadd.f32 %v2391_v2, %v912_v6  ;;  %v1637_v8 = vpop.f32.mrb[41].mxu0  ;;  %1722 = vmatmul.mubr.f32.vlgmr.msra.gmra.mrb[76].mxu0 %v1001_v5 }
 0x2bb   : > { %1724 = vmatprep.mubr.msk.f32.mxu0 %vm1937_vm0, %v1938_v1 }
 0x2bc   : > { %v1002_v9 = vmax.f32 %v913_v7, 0.0 }
 0x2bd   : > { %v917_v11 = vpop.f32.mrb[42].mxu0 }
 0x2be   : > { %v918_v12 = vadd.f32 %v2391_v2, %v917_v11  ;;  %v1640_v13 = vpop.f32.mrb[43].mxu0  ;;  %1725 = vmatmul.mubr.f32.gmra.mrb[78].mxu0 %v1002_v9 }
 0x2bf   : > { %1727 = vmatprep.mubr.msk.f32.mxu0 %vm1937_vm0, %v1938_v1 }
 0x2c0   : > { %v1003_v14 = vmax.f32 %v918_v12, 0.0 }
 0x2c1   : > { %v922_v15 = vpop.f32.mrb[44].mxu0 }
 0x2c2   : > { %v923_v16 = vadd.f32 %v2391_v2, %v922_v15  ;;  %v1643_v17 = vpop.f32.mrb[45].mxu0  ;;  %1728 = vmatmul.mubr.f32.gmra.mrb[80].mxu0 %v1003_v14 }
 0x2c3   : > { %v2449_v17 = vld [vmem:[%s2507_s8] ss:$0 sm:$0xff] }
 0x2c4   : > { %v1004_v18 = vmax.f32 %v923_v16, 0.0 }
 0x2c5   : > { %v927_v19 = vpop.f32.mrb[46].mxu0 }
 0x2c6   : > { %v928_v20 = vadd.f32 %v2391_v2, %v927_v19  ;;  %v1646_v21 = vpop.f32.mrb[47].mxu0  ;;  %1731 = vmatmul.mubr.f32.vlgmr.msra.gmra.mrb[38].mxu1 %v1004_v18 }
 0x2c7   : > { %1733 = vmatprep.mubr.msk.f32.mxu1 %vm1937_vm0, %v1938_v1 }
 0x2c8   : > { %v1005_v22 = vmax.f32 %v928_v20, 0.0 }
 0x2c9   : > { %v932_v23 = vpop.f32.mrb[48].mxu0 }
 0x2ca   : > { %v933_v24 = vadd.f32 %v2391_v2, %v932_v23  ;;  %v1649_v25 = vpop.f32.mrb[49].mxu0  ;;  %1734 = vmatmul.mubr.f32.gmra.mrb[40].mxu1 %v1005_v22 }
 0x2cb   : > { %1736 = vmatprep.mubr.msk.f32.mxu1 %vm1937_vm0, %v1938_v1 }
 0x2cc   : > { %v1006_v26 = vmax.f32 %v933_v24, 0.0 }
 0x2cd   : > { %v937_v0 = vpop.f32.mrb[50].mxu0 }
 0x2ce   : > { %v938_v27 = vadd.f32 %v2391_v2, %v937_v0  ;;  %v1652_v28 = vpop.f32.mrb[51].mxu0  ;;  %1737 = vmatmul.mubr.f32.gmra.mrb[42].mxu1 %v1006_v26 }
 0x2cf   : > { %1739 = vmatprep.mubr.msk.f32.mxu1 %vm1937_vm0, %v1938_v1 }
 0x2d0   : > { %v1007_v29 = vmax.f32 %v938_v27, 0.0 }
 0x2d1   : > { %v942_v30 = vpop.f32.mrb[52].mxu0 }
 0x2d2   : > { %v943_v31 = vadd.f32 %v2391_v2, %v942_v30  ;;  %v1655_v10 = vpop.f32.mrb[53].mxu0  ;;  %1740 = vmatmul.mubr.f32.gmra.mrb[44].mxu1 %v1007_v29 }
 0x2d3   : > { %1742 = vmatprep.mubr.msk.f32.mxu1 %vm1937_vm0, %v1938_v1 }
 0x2d4   : > { %v1008_v32 = vmax.f32 %v943_v31, 0.0 }
 0x2d5   : > { %v947_v33 = vpop.f32.mrb[54].mxu0 }
 0x2d6   : > { %v948_v34 = vadd.f32 %v2391_v2, %v947_v33  ;;  %v1658_v35 = vpop.f32.mrb[55].mxu0  ;;  %1743 = vmatmul.mubr.f32.gmra.mrb[46].mxu1 %v1008_v32 }
 0x2d7   : > { %1745 = vmatprep.mubr.msk.f32.mxu1 %vm1937_vm0, %v1938_v1 }
 0x2d8   : > { %v1009_v36 = vmax.f32 %v948_v34, 0.0 }
 0x2d9   : > { %v952_v37 = vpop.f32.mrb[56].mxu0 }
 0x2da   : > { %v953_v38 = vadd.f32 %v2391_v2, %v952_v37  ;;  %v1661_v39 = vpop.f32.mrb[57].mxu0  ;;  %1746 = vmatmul.mubr.f32.gmra.mrb[48].mxu1 %v1009_v36 }
 0x2db   : > { %1748 = vmatprep.mubr.msk.f32.mxu1 %vm1937_vm0, %v1938_v1 }
 0x2dc   : > { %v1010_v40 = vmax.f32 %v953_v38, 0.0 }
 0x2dd   : > { %v957_v41 = vpop.f32.mrb[58].mxu0 }
 0x2de   : > { %v958_v42 = vadd.f32 %v2391_v2, %v957_v41  ;;  %v1664_v43 = vpop.f32.mrb[59].mxu0  ;;  %1749 = vmatmul.mubr.f32.gmra.mrb[50].mxu1 %v1010_v40 }
 0x2df   : > { %1751 = vmatprep.mubr.msk.f32.mxu1 %vm1937_vm0, %v1938_v1 }
 0x2e0   : > { %v1011_v44 = vmax.f32 %v958_v42, 0.0 }
 0x2e1   : > { %v962_v45 = vpop.f32.mrb[60].mxu0 }
 0x2e2   : > { %v963_v47 = vadd.f32 %v2391_v2, %v962_v45  ;;  %v1667_v48 = vpop.f32.mrb[61].mxu0  ;;  %1752 = vmatmul.mubr.f32.gmra.mrb[52].mxu1 %v1011_v44 }
 0x2e3   : > { %1754 = vmatprep.mubr.msk.f32.mxu1 %vm1937_vm0, %v1938_v1 }
 0x2e4   : > { %v1012_v49 = vmax.f32 %v963_v47, 0.0 }
 0x2e5   : > { %v967_v50 = vpop.f32.mrb[62].mxu0 }
 0x2e6   : > { %v968_v51 = vadd.f32 %v2391_v2, %v967_v50  ;;  %v1670_v52 = vpop.f32.mrb[63].mxu0  ;;  %1755 = vmatmul.mubr.f32.gmra.mrb[54].mxu1 %v1012_v49 }
 0x2e7   : > { %1757 = vmatprep.mubr.msk.f32.mxu1 %vm1937_vm0, %v1938_v1 }
 0x2e8   : > { %v1013_v53 = vmax.f32 %v968_v51, 0.0 }
 0x2e9   : > { %v972_v54 = vpop.f32.mrb[64].mxu0 }
 0x2ea   : > { %v973_v55 = vadd.f32 %v2391_v2, %v972_v54  ;;  %v1673_v56 = vpop.f32.mrb[65].mxu0  ;;  %1758 = vmatmul.mubr.f32.gmra.mrb[56].mxu1 %v1013_v53 }
 0x2eb   : > { %1760 = vmatprep.mubr.msk.f32.mxu1 %vm1937_vm0, %v1938_v1 }
 0x2ec   : > { %v1014_v57 = vmax.f32 %v973_v55, 0.0 }
 0x2ed   : > { %v977_v58 = vpop.f32.mrb[66].mxu0 }
 0x2ee   : > { %v978_v59 = vadd.f32 %v2391_v2, %v977_v58  ;;  %v1676_v60 = vpop.f32.mrb[67].mxu0  ;;  %1761 = vmatmul.mubr.f32.gmra.mrb[58].mxu1 %v1014_v57 }
 0x2ef   : > { %1763 = vmatprep.mubr.msk.f32.mxu1 %vm1937_vm0, %v1938_v1 }
 0x2f0   : > { %v1015_v61 = vmax.f32 %v978_v59, 0.0 }
 0x2f1   : > { %v982_v62 = vpop.f32.mrb[68].mxu0 }
 0x2f2   : > { %v983_v63 = vadd.f32 %v2391_v2, %v982_v62  ;;  %v1679_v46 = vpop.f32.mrb[69].mxu0  ;;  %1764 = vmatmul.mubr.f32.gmra.mrb[60].mxu1 %v1015_v61 }
 0x2f3   : > { %1766 = vmatprep.mubr.msk.f32.mxu1 %vm1937_vm0, %v1938_v1 }
 0x2f4   : > { %v1016_v3 = vmax.f32 %v983_v63, 0.0 }
 0x2f5   : > { %v987_v4 = vpop.f32.mrb[70].mxu0 }
 0x2f6   : > { %v988_v5 = vadd.f32 %v2391_v2, %v987_v4  ;;  %v1682_v6 = vpop.f32.mrb[71].mxu0  ;;  %1767 = vmatmul.mubr.f32.gmra.mrb[62].mxu1 %v1016_v3 }
 0x2f7   : > { %1769 = vmatprep.mubr.msk.f32.mxu1 %vm1937_vm0, %v1938_v1 }
 0x2f8   : > { %v1017_v7 = vmax.f32 %v988_v5, 0.0 }
 0x2f9   : > { %v992_v8 = vpop.f32.mrb[72].mxu0 }
 0x2fa   : > { %v993_v9 = vadd.f32 %v2391_v2, %v992_v8  ;;  %v1685_v11 = vpop.f32.mrb[73].mxu0  ;;  %1770 = vmatmul.mubr.f32.gmra.mrb[64].mxu1 %v1017_v7 }
 0x2fb   : > { %1772 = vmatprep.mubr.msk.f32.mxu1 %vm1937_vm0, %v1938_v1 }
 0x2fc   : > { %v1018_v12 = vmax.f32 %v993_v9, 0.0 }
 0x2fd   : > { %v997_v13 = vpop.f32.mrb[74].mxu0 }
 0x2fe   : > { %v998_v14 = vadd.f32 %v2391_v2, %v997_v13  ;;  %v1688_v15 = vpop.f32.mrb[75].mxu0  ;;  %1773 = vmatmul.mubr.f32.gmra.mrb[66].mxu1 %v1018_v12 }
 0x2ff   : > { %1775 = vmatprep.mubr.msk.f32.mxu1 %vm1937_vm0, %v1938_v1 }
 0x300   : > { %v1019_v16 = vmax.f32 %v998_v14, 0.0 }
 0x302   : > { %1776 = vmatmul.mubr.f32.gmra.mrb[68].mxu1 %v1019_v16 }
 0x38d   : > { %v1109_v2 = vpop.f32.mrb[76].mxu0 }
 0x38e   : > { %v1110_v1 = vadd.f32 %v2449_v17, %v1109_v2  ;;  %v1723_v18 = vpop.f32.mrb[77].mxu0 }
 0x390   : > { %1203 = vst [vmem:[%s2456_s20] sm:$0xff] %v1110_v1 }
 0x391   : > { %v1114_v19 = vpop.f32.mrb[78].mxu0 }
 0x392   : > { %v1115_v20 = vadd.f32 %v2449_v17, %v1114_v19  ;;  %v1726_v21 = vpop.f32.mrb[79].mxu0 }
 0x394   : > { %1204 = vst [vmem:[%s2456_s20 + $0x8] sm:$0xff] %v1115_v20 }
 0x395   : > { %v1119_v22 = vpop.f32.mrb[80].mxu0 }
 0x396   : > { %v1120_v23 = vadd.f32 %v2449_v17, %v1119_v22  ;;  %v1729_v24 = vpop.f32.mrb[81].mxu0 }
 0x398   : > { %1205 = vst [vmem:[%s2456_s20 + $0x10] sm:$0xff] %v1120_v23 }
 0x399   : > { %v1124_v25 = vpop.f32.mrb[38].mxu1 }
 0x39a   : > { %v1125_v26 = vadd.f32 %v2449_v17, %v1124_v25  ;;  %v1732_v0 = vpop.f32.mrb[39].mxu1 }
 0x39c   : > { %1206 = vst [vmem:[%s2456_s20 + $0x18] sm:$0xff] %v1125_v26 }
 0x39d   : > { %v1129_v27 = vpop.f32.mrb[40].mxu1 }
 0x39e   : > { %v1130_v28 = vadd.f32 %v2449_v17, %v1129_v27  ;;  %v1735_v29 = vpop.f32.mrb[41].mxu1 }
 0x3a0   : > { %1207 = vst [vmem:[%s2456_s20 + $0x20] sm:$0xff] %v1130_v28 }
 0x3a1   : > { %v1134_v30 = vpop.f32.mrb[42].mxu1 }
 0x3a2   : > { %v1135_v31 = vadd.f32 %v2449_v17, %v1134_v30  ;;  %v1738_v10 = vpop.f32.mrb[43].mxu1 }
 0x3a4   : > { %1208 = vst [vmem:[%s2456_s20 + $0x28] sm:$0xff] %v1135_v31 }
 0x3a5   : > { %v1139_v32 = vpop.f32.mrb[44].mxu1 }
 0x3a6   : > { %v1140_v33 = vadd.f32 %v2449_v17, %v1139_v32  ;;  %v1741_v34 = vpop.f32.mrb[45].mxu1 }
 0x3a8   : > { %1209 = vst [vmem:[%s2456_s20 + $0x30] sm:$0xff] %v1140_v33 }
 0x3a9   : > { %v1144_v35 = vpop.f32.mrb[46].mxu1 }
 0x3aa   : > { %v1145_v36 = vadd.f32 %v2449_v17, %v1144_v35  ;;  %v1744_v37 = vpop.f32.mrb[47].mxu1 }
 0x3ac   : > { %1210 = vst [vmem:[%s2456_s20 + $0x38] sm:$0xff] %v1145_v36 }
 0x3ad   : > { %v1149_v38 = vpop.f32.mrb[48].mxu1 }
 0x3ae   : > { %v1150_v39 = vadd.f32 %v2449_v17, %v1149_v38  ;;  %v1747_v40 = vpop.f32.mrb[49].mxu1 }
 0x3b0   : > { %1211 = vst [vmem:[%s2456_s20 + $0x40] sm:$0xff] %v1150_v39 }
 0x3b1   : > { %v1154_v41 = vpop.f32.mrb[50].mxu1 }
 0x3b2   : > { %v1155_v42 = vadd.f32 %v2449_v17, %v1154_v41  ;;  %v1750_v43 = vpop.f32.mrb[51].mxu1 }
 0x3b4   : > { %1212 = vst [vmem:[%s2456_s20 + $0x48] sm:$0xff] %v1155_v42 }
 0x3b5   : > { %v1159_v44 = vpop.f32.mrb[52].mxu1 }
 0x3b6   : > { %v1160_v45 = vadd.f32 %v2449_v17, %v1159_v44  ;;  %v1753_v47 = vpop.f32.mrb[53].mxu1 }
 0x3b8   : > { %1213 = vst [vmem:[%s2456_s20 + $0x50] sm:$0xff] %v1160_v45 }
 0x3b9   : > { %v1164_v48 = vpop.f32.mrb[54].mxu1 }
 0x3ba   : > { %v1165_v49 = vadd.f32 %v2449_v17, %v1164_v48  ;;  %v1756_v50 = vpop.f32.mrb[55].mxu1 }
 0x3bc   : > { %1214 = vst [vmem:[%s2456_s20 + $0x58] sm:$0xff] %v1165_v49 }
 0x3bd   : > { %v1169_v51 = vpop.f32.mrb[56].mxu1 }
 0x3be   : > { %v1170_v52 = vadd.f32 %v2449_v17, %v1169_v51  ;;  %v1759_v53 = vpop.f32.mrb[57].mxu1 }
 0x3c0   : > { %1215 = vst [vmem:[%s2456_s20 + $0x60] sm:$0xff] %v1170_v52 }
 0x3c1   : > { %v1174_v54 = vpop.f32.mrb[58].mxu1 }
 0x3c2   : > { %v1175_v55 = vadd.f32 %v2449_v17, %v1174_v54  ;;  %v1762_v56 = vpop.f32.mrb[59].mxu1 }
 0x3c4   : > { %1216 = vst [vmem:[%s2456_s20 + $0x68] sm:$0xff] %v1175_v55 }
 0x3c5   : > { %v1179_v57 = vpop.f32.mrb[60].mxu1 }
 0x3c6   : > { %v1180_v58 = vadd.f32 %v2449_v17, %v1179_v57  ;;  %v1765_v59 = vpop.f32.mrb[61].mxu1 }
 0x3c8   : > { %1217 = vst [vmem:[%s2456_s20 + $0x70] sm:$0xff] %v1180_v58 }
 0x3c9   : > { %v1184_v60 = vpop.f32.mrb[62].mxu1 }
 0x3ca   : > { %v1185_v61 = vadd.f32 %v2449_v17, %v1184_v60  ;;  %v1768_v62 = vpop.f32.mrb[63].mxu1 }
 0x3cc   : > { %1218 = vst [vmem:[%s2456_s20 + $0x78] sm:$0xff] %v1185_v61 }
 0x3cd   : > { %v1189_v63 = vpop.f32.mrb[64].mxu1 }
 0x3ce   : > { %v1190_v46 = vadd.f32 %v2449_v17, %v1189_v63  ;;  %v1771_v3 = vpop.f32.mrb[65].mxu1 }
 0x3d0   : > { %1219 = vst [vmem:[%s2456_s20 + $0x80] sm:$0xff] %v1190_v46 }
 0x3d1   : > { %v1194_v4 = vpop.f32.mrb[66].mxu1 }
 0x3d2   : > { %v1195_v5 = vadd.f32 %v2449_v17, %v1194_v4  ;;  %v1774_v6 = vpop.f32.mrb[67].mxu1 }
 0x3d4   : > { %1220 = vst [vmem:[%s2456_s20 + $0x88] sm:$0xff] %v1195_v5 }
 0x3d5   : > { %v1199_v7 = vpop.f32.mrb[68].mxu1 }
 0x3d6   : > { %v1200_v8 = vadd.f32 %v2449_v17, %v1199_v7  ;;  %v1777_v9 = vpop.f32.mrb[69].mxu1 }
 0x3d8   : > { %1221 = vst [vmem:[%s2456_s20 + $0x90] sm:$0xff] %v1200_v8 }
 0x3d9 PF: > { %s20_s30 = sadd.s32 1, %s1931_s30  }
 0x3da   : > { %p17_p3 = scmp.ge.s32.totalorder %s20_s30, 4  }
 0x3dc   :  { %19 = sbr.rel (!%p17_p3) target bundleno = 1 (0x1), region = 91 }
 0x3e3   :  { %1244 = vsyncpa [#allocation3], 1 }
 0x3e4   :  { %1246 = vsyncpa [#allocation3 + $0x1], 1 }

</bundles_post_ra>
